<compile_context>
chip_gen: v7x
topology: tpu7x:2x2x1
jax: 0.10.0
libtpu: 0.0.40
codegen_flags: <defaults>
</compile_context>

<pallas_src>
import functools

import jax
import jax.numpy as jnp
from jax.experimental import pallas as pl
from jax.experimental.pallas import tpu as pltpu


def _round_up(v: int, mult: int) -> int:
    return (v + mult - 1) // mult * mult


def _pick_tile_n(n: int, d_pad: int, m_pad: int, requested: int) -> int:
    """Largest N-tile (multiple of 128) whose working set fits the VMEM budget."""
    tile = max(128, _round_up(requested, 128))
    tile = min(tile, _round_up(n, 128))      # don't over-tile tiny batches

    budget = 24 * 1024 * 1024                # leave headroom under 32 MiB scoped

    def vmem_need(t):
        return 4 * (2 * t * d_pad            # double-buffered x tile
                    + 2 * m_pad * d_pad      # resident support vectors (+slack)
                    + 4 * t * m_pad          # kernel-matrix temporaries
                    + 4 * m_pad + 2 * t)     # small vectors / output tile

    while tile > 128 and vmem_need(tile) > budget:
        tile -= 128
    return tile


def _svr_rbf_kernel(x_ref, svs_ref, nss_ref, dual_ref, out_ref, *, gamma, intercept):
    """One N-tile of the RBF-SVR decision function.

    x_ref    : VMEM (TILE_N, D_pad)  tile of input samples
    svs_ref  : VMEM (M_pad, D_pad)   2*gamma * support vectors (resident)
    nss_ref  : VMEM (1, M_pad)       -gamma * ||sv||^2         (resident)
    dual_ref : VMEM (1, M_pad)       dual coefficients          (resident)
    out_ref  : VMEM (1, TILE_N)      lane-dense scores for this tile
    """
    x = x_ref[...]          # (TILE_N, D_pad) f32
    svs = svs_ref[...]      # (M_pad, D_pad)  f32
    nss = nss_ref[...]      # (1, M_pad)      f32
    dual = dual_ref[...]    # (1, M_pad)      f32

    # -gamma * ||x_n||^2 per row: XLU cross-lane reduce + tiny (TILE_N,1) scale.
    nxx = jnp.sum(x * x, axis=-1, keepdims=True) * (-gamma)        # (TILE_N, 1)

    # 2*gamma * (x @ sv^T) on the MXU, f32 accumulation.
    cross = jax.lax.dot_general(
        x, svs, (((1,), (1,)), ((), ())),
        preferred_element_type=jnp.float32)                        # (TILE_N, M_pad)

    # exponent = -gamma * max(||x-sv||^2, 0)  (clip matches sklearn's rbf_kernel)
    expo = jnp.minimum(cross + nxx + nss, 0.0)                     # (TILE_N, M_pad)
    k = jnp.exp(expo)                                              # EUP exp

    # Weighted sum over support vectors, emitted lane-dense as (1, TILE_N).
    scores = jax.lax.dot_general(
        dual, k, (((1,), (1,)), ((), ())),
        preferred_element_type=jnp.float32)                        # (1, TILE_N)

    out_ref[...] = scores + intercept


def svr_predict(x, support_vectors, dual_coef, gamma, intercept, *, tile_n=2048):
    """Pallas equivalent of SvrPredictor.forward(x) == SVR.predict(x) (RBF)."""
    x = jnp.asarray(x, jnp.float32)
    support_vectors = jnp.asarray(support_vectors, jnp.float32)
    dual_coef = jnp.asarray(dual_coef, jnp.float32).reshape(1, -1)
    gamma = float(gamma)
    intercept = float(intercept)

    n, d = x.shape
    m = support_vectors.shape[0]

    # --- padding to TPU-friendly geometry -----------------------------------
    d_pad = _round_up(d, 128)                    # lanes (feature dim)
    m_pad = _round_up(m, 128)                    # lanes of the kernel matrix
    tile_n = _pick_tile_n(n, d_pad, m_pad, tile_n)
    n_pad = _round_up(n, tile_n)
    grid_n = n_pad // tile_n

    x_p = jnp.zeros((n_pad, d_pad), jnp.float32).at[:n, :d].set(x)
    sv_p = jnp.zeros((m_pad, d_pad), jnp.float32).at[:m, :d].set(support_vectors)
    # Zero dual coefficients on padded support-vector rows kill their contribution.
    dual_p = jnp.zeros((1, m_pad), jnp.float32).at[:, :m].set(dual_coef)
    # Grid-invariant, gamma-folded operands (hoisted out of the kernel loop).
    nss_p = (-gamma) * jnp.sum(sv_p * sv_p, axis=1).reshape(1, m_pad)   # (1, m_pad)
    sv_scaled = (2.0 * gamma) * sv_p                                    # (m_pad, d_pad)

    kernel = functools.partial(_svr_rbf_kernel, gamma=gamma, intercept=intercept)

    cost = pl.CostEstimate(
        flops=2 * n_pad * m_pad * d_pad + 2 * n_pad * m_pad + 4 * n_pad * m_pad,
        transcendentals=n_pad * m_pad,
        bytes_accessed=4 * (n_pad * d_pad + m_pad * d_pad + 2 * m_pad + n_pad),
    )

    out = pl.pallas_call(
        kernel,
        out_shape=jax.ShapeDtypeStruct((grid_n, tile_n), jnp.float32),
        grid=(grid_n,),
        in_specs=[
            pl.BlockSpec((tile_n, d_pad), lambda i: (i, 0)),   # x tile (pipelined)
            pl.BlockSpec((m_pad, d_pad), lambda i: (0, 0)),    # 2*gamma*sv (resident)
            pl.BlockSpec((1, m_pad), lambda i: (0, 0)),        # -gamma*||sv||^2
            pl.BlockSpec((1, m_pad), lambda i: (0, 0)),        # dual coefficients
        ],
        out_specs=pl.BlockSpec((1, tile_n), lambda i: (i, 0)), # lane-dense output
        compiler_params=pltpu.CompilerParams(
            dimension_semantics=("parallel",),
            vmem_limit_bytes=32 * 1024 * 1024,
        ),
        cost_estimate=cost,
    )(x_p, sv_scaled, nss_p, dual_p)

    # (grid_n, tile_n) slab -> flat (n_pad,) -> first n rows; matches SVR.predict.
    return out.reshape(-1)[:n]


def svr_predict_ref(x, support_vectors, dual_coef, gamma, intercept):
    """Pure-JAX reference of sklearn's RBF SVR decision function."""
    d2 = (jnp.sum(x * x, axis=1, keepdims=True)
          + jnp.sum(support_vectors * support_vectors, axis=1)[None, :]
          - 2.0 * x @ support_vectors.T)
    d2 = jnp.maximum(d2, 0.0)
    k = jnp.exp(-gamma * d2)
    return k @ jnp.asarray(dual_coef).reshape(-1) + intercept


if __name__ == "__main__":
    # Deterministic synthetic "fitted SVR" state + inputs (small shapes).
    N, D, M = 8, 32, 16              # samples, features, support vectors
    GAMMA = 0.5                      # SVR(gamma=0.5, C=1.0, epsilon=0.1)
    INTERCEPT = 0.1

    key = jax.random.PRNGKey(0)
    kx, ksv, kdc = jax.random.split(key, 3)
    x = jax.random.normal(kx, (N, D), dtype=jnp.float32)
    support_vectors = jax.random.normal(ksv, (M, D), dtype=jnp.float32)
    # dual_coef in sklearn is shape (1, n_SV), values in [-C, C]
    dual_coef = jax.random.uniform(kdc, (1, M), dtype=jnp.float32,
                                   minval=-1.0, maxval=1.0)

    y = svr_predict(x, support_vectors, dual_coef, GAMMA, INTERCEPT)
    y = jax.block_until_ready(y)

    y_ref = svr_predict_ref(x, support_vectors, dual_coef, GAMMA, INTERCEPT)
    assert y.shape == (N,), y.shape
    assert jnp.allclose(y, y_ref, atol=1e-5, rtol=1e-5), (y, y_ref)

    print("KERNEL_OK")
</pallas_src>

<mosaic_0001>
module attributes {stable_mosaic.version = 11 : i64} {
  func.func @_svr_rbf_kernel(%arg0: i32, %arg1: memref<128x128xf32, #tpu.memory_space<vmem>>, %arg2: memref<128x128xf32, #tpu.memory_space<vmem>>, %arg3: memref<1x128xf32, #tpu.memory_space<vmem>>, %arg4: memref<1x128xf32, #tpu.memory_space<vmem>>, %arg5: memref<1x128xf32, #tpu.memory_space<vmem>>) attributes {dimension_semantics = [#tpu.dimension_semantics<parallel>], iteration_bounds = array<i64: 1>, scalar_prefetch = 0 : i64, scratch_operands = 0 : i64, tpu.core_type = #tpu.core_type<tc>, window_params = [{transform_indices = @transform_0, window_bounds = array<i64: 128, 128>}, {pipeline_mode = #tpu.pipeline_mode<synchronous>, transform_indices = @transform_1, window_bounds = array<i64: 128, 128>}, {pipeline_mode = #tpu.pipeline_mode<synchronous>, transform_indices = @transform_2, window_bounds = array<i64: 1, 128>}, {pipeline_mode = #tpu.pipeline_mode<synchronous>, transform_indices = @transform_3, window_bounds = array<i64: 1, 128>}, {transform_indices = @transform_4, window_bounds = array<i64: 1, 128>}]} {
    %c0 = arith.constant 0 : index
    %c0_0 = arith.constant 0 : index
    %0 = vector.load %arg1[%c0, %c0_0] : memref<128x128xf32, #tpu.memory_space<vmem>>, vector<128x128xf32>
    %c0_1 = arith.constant 0 : index
    %c0_2 = arith.constant 0 : index
    %1 = vector.load %arg2[%c0_1, %c0_2] : memref<128x128xf32, #tpu.memory_space<vmem>>, vector<128x128xf32>
    %c0_3 = arith.constant 0 : index
    %c0_4 = arith.constant 0 : index
    %2 = vector.load %arg3[%c0_3, %c0_4] : memref<1x128xf32, #tpu.memory_space<vmem>>, vector<1x128xf32>
    %c0_5 = arith.constant 0 : index
    %c0_6 = arith.constant 0 : index
    %3 = vector.load %arg4[%c0_5, %c0_6] : memref<1x128xf32, #tpu.memory_space<vmem>>, vector<1x128xf32>
    %4 = arith.mulf %0, %0 : vector<128x128xf32>
    %cst = arith.constant dense<0.000000e+00> : vector<128xf32>
    %5 = vector.multi_reduction <add>, %4, %cst [1] : vector<128x128xf32> to vector<128xf32>
    %6 = vector.shape_cast %5 : vector<128xf32> to vector<128x1xf32>
    %cst_7 = arith.constant -5.000000e-01 : f32
    %7 = vector.broadcast %cst_7 : f32 to vector<128x1xf32>
    %8 = arith.mulf %6, %7 : vector<128x1xf32>
    %cst_8 = arith.constant dense<0.000000e+00> : vector<128x128xf32>
    %9 = tpu.matmul %0, %1, %cst_8 {dimension_numbers = #tpu.dot_dimension_numbers<[1], [1], [0], [0], [0, 0, 1, 0], [], []>} : vector<128x128xf32>, vector<128x128xf32>, vector<128x128xf32> -> vector<128x128xf32>
    %10 = vector.broadcast %8 : vector<128x1xf32> to vector<128x128xf32>
    %11 = arith.addf %9, %10 : vector<128x128xf32>
    %12 = vector.broadcast %2 : vector<1x128xf32> to vector<128x128xf32>
    %13 = arith.addf %11, %12 : vector<128x128xf32>
    %cst_9 = arith.constant 0.000000e+00 : f32
    %14 = vector.broadcast %cst_9 : f32 to vector<128x128xf32>
    %15 = arith.minimumf %13, %14 : vector<128x128xf32>
    %16 = math.exp %15 : vector<128x128xf32>
    %cst_10 = arith.constant dense<0.000000e+00> : vector<1x128xf32>
    %17 = tpu.matmul %3, %16, %cst_10 {dimension_numbers = #tpu.dot_dimension_numbers<[1], [1], [0], [0], [0, 0, 1, 0], [], []>} : vector<1x128xf32>, vector<128x128xf32>, vector<1x128xf32> -> vector<1x128xf32>
    %cst_11 = arith.constant 1.000000e-01 : f32
    %18 = vector.broadcast %cst_11 : f32 to vector<1x128xf32>
    %19 = arith.addf %17, %18 : vector<1x128xf32>
    %c0_12 = arith.constant 0 : index
    %c0_13 = arith.constant 0 : index
    %20 = vector.load %arg5[%c0_12, %c0_13] : memref<1x128xf32, #tpu.memory_space<vmem>>, vector<1x128xf32>
    tpu.vector_store %arg5[%c0_12, %c0_13], %19 {strides = array<i32>} : memref<1x128xf32, #tpu.memory_space<vmem>>, vector<1x128xf32>,
    return
  }
  func.func @transform_0(%arg0: i32) -> (i32, i32) {
    %c0_i32 = arith.constant 0 : i32
    %c0_i32_0 = arith.constant 0 : i32
    return %arg0, %c0_i32 : i32, i32
  }
  func.func @transform_1(%arg0: i32) -> (i32, i32) {
    %c0_i32 = arith.constant 0 : i32
    %c0_i32_0 = arith.constant 0 : i32
    %c0_i32_1 = arith.constant 0 : i32
    return %c0_i32, %c0_i32_0 : i32, i32
  }
  func.func @transform_2(%arg0: i32) -> (i32, i32) {
    %c0_i32 = arith.constant 0 : i32
    %c0_i32_0 = arith.constant 0 : i32
    %c0_i32_1 = arith.constant 0 : i32
    return %c0_i32, %c0_i32_0 : i32, i32
  }
  func.func @transform_3(%arg0: i32) -> (i32, i32) {
    %c0_i32 = arith.constant 0 : i32
    %c0_i32_0 = arith.constant 0 : i32
    %c0_i32_1 = arith.constant 0 : i32
    return %c0_i32, %c0_i32_0 : i32, i32
  }
  func.func @transform_4(%arg0: i32) -> (i32, i32) {
    %c0_i32 = arith.constant 0 : i32
    %c0_i32_0 = arith.constant 0 : i32
    return %arg0, %c0_i32 : i32, i32
  }
}

</mosaic_0001>

<bundles_post_ra>
// kernel: tpu_custom_call.1
= control target key start
LH: loop header
LB: loop body
LE: loop exit
PB: predicated region body
PF: predicated region fallthrough
CT: control target
= control target key end

     0   :  { %9 = vsyncpa [#allocation3], 0  ;;  %s881_s0 = inlined_call_operand.hbm [shape: f32[128,128], index: 0, kind: input, shape index: {}]   ;;  %s882_s1 = inlined_call_operand.hbm [shape: f32[128,128], index: 1, kind: input, shape index: {}]   ;;  %s883_s2 = inlined_call_operand.vmem [shape: f32[1,128], index: 2, kind: input, shape index: {}]   ;;  %s884_s3 = inlined_call_operand.vmem [shape: f32[1,128], index: 3, kind: input, shape index: {}]   ;;  %s885_s4 = inlined_call_operand.hbm [shape: f32[1,128], index: 4, kind: output, shape index: {}]  }
   0x1   :  { %10 = vsyncpa [#allocation6], 0 }
   0x2   :  { %11 = vsyncpa [#allocation4], 0  ;;  %s755_s15 = smov [#allocation2]   ;;  %s683_s19 = scalar_lea.hbm %s881_s0, 2048 }
   0x3   :  { %s17_s16 = sshll.u32 %s755_s15, 4  ;;  %p684_p0 = scmp.ne.s32.totalorder %s881_s0, %s683_s19  ;;  %s18_s16 = int_to_ptr.vmem [resolvable:$true] %s17_s16 }
   0x4   :  { %p687_p1 = scmp.lt.u32.totalorder %s683_s19, %s881_s0 }
   0x6   :  { %p689_p2 = pnand %p687_p1, %p684_p0 }
   0x8   :  { %692 = shalt.err (!%p689_p2)
}
   0x9   :  { %s693_s24 = scalar_lea.vmem %s18_s16, 2048  ;;  %p698_p4 = scmp.lt.s32.totalorder %s18_s16, %s18_s16 }
   0xa   :  { %p694_p3 = scmp.ne.s32.totalorder %s18_s16, %s693_s24  ;;  %p699_p5 = scmp.lt.s32.totalorder %s693_s24, %s693_s24 }
   0xc   :  { %p700_p6 = por %p699_p5, %p698_p4 }
   0xe   :  { %p701_p7 = pnand %p700_p6, %p694_p3 }
  0x10   :  { %704 = shalt.err (!%p701_p7)
}
  0x11   :  { %s756_s25 = smov 128   ;;  %s757_s26 = smov 8  }
  0x12   :  { %23 = dma.hbm_to_vmem [thread:$0]  %s881_s0, 2048, %s18_s16, [#allocation3], %s756_s25, %s756_s25, %s757_s26  }
  0x13   :  { %s758_s29 = smov [#allocation5]   ;;  %s705_s7 = scalar_lea.hbm %s882_s1, 2048 }
  0x14   :  { %s29_s30 = sshll.u32 %s758_s29, 4  ;;  %p706_p8 = scmp.ne.s32.totalorder %s882_s1, %s705_s7  ;;  %s30_s30 = int_to_ptr.vmem [resolvable:$true] %s29_s30 }
  0x15   :  { %p709_p9 = scmp.lt.u32.totalorder %s705_s7, %s882_s1 }
  0x17   :  { %p711_p10 = pnand %p709_p9, %p706_p8 }
  0x19   :  { %714 = shalt.err (!%p711_p10)
}
  0x1a   :  { %s715_s12 = scalar_lea.vmem %s30_s30, 2048  ;;  %p720_p12 = scmp.lt.s32.totalorder %s30_s30, %s30_s30 }
  0x1b   :  { %p716_p11 = scmp.ne.s32.totalorder %s30_s30, %s715_s12  ;;  %p721_p13 = scmp.lt.s32.totalorder %s715_s12, %s715_s12 }
  0x1d   :  { %p722_p0 = por %p721_p13, %p720_p12 }
  0x1f   :  { %p723_p1 = pnand %p722_p0, %p716_p11 }
  0x21   :  { %726 = shalt.err (!%p723_p1)
}
  0x22   :  { %35 = dma.hbm_to_vmem [thread:$0]  %s882_s1, 2048, %s30_s30, [#allocation6], %s756_s25, %s756_s25, %s757_s26  }
  0x23   :  { %749 = dma.done.wait [#allocation3], 2048  }
  0x24   :  { %750 = vsyncadd [#allocation3], 4294965248 }
  0x25   :  { %751 = dma.done.wait [#allocation6], 2048  }
  0x26   :  { %752 = vsyncadd [#allocation6], 4294965248  ;;  %v62_v0 = vld [vmem:[#allocation5] sm:$0xff]  ;;  %v63_v1 = vld [vmem:[#allocation5 + $0x8] sm:$0xff]  ;;  %v759_v56 = vmov 0.0|0.0   ;;  %vm760_vm0 = vmmov 0  }
  0x27   :  { %v64_v2 = vld [vmem:[#allocation5 + $0x10] sm:$0xff]  ;;  %v587_v3 = vpack.c.bf16 %v63_v1, %v62_v0  ;;  %v65_v4 = vld [vmem:[#allocation5 + $0x18] sm:$0xff]  ;;  %v46_v6 = vld [vmem:[#allocation2] sm:$0xff]  ;;  %619 = vmatprep.subr.bf16.mxu1 %v759_v56  ;;  %v761_v57 = vmov 0.0   ;;  %s762_s16 = smov [#allocation7]  }
  0x28   :  { %v591_v5 = vpack.c.bf16 %v65_v4, %v64_v2  ;;  %v66_v7 = vld [vmem:[#allocation5 + $0x20] sm:$0xff]  ;;  %v67_v8 = vld [vmem:[#allocation5 + $0x28] sm:$0xff]  ;;  %528 = vmatprep.mubr.f32.mxu0 %v46_v6  ;;  %v812_v9 = vld [vmem:[#allocation2 + $0x10] sm:$0xff]  ;;  %v80_v10 = vmul.f32 %v46_v6, %v46_v6  ;;  %584 = vmatprep.mubr.msk.f32.mxu1 %vm760_vm0, %v761_v57  ;;  %s436_s17 = sshll.u32 %s762_s16, 4  ;;  %s437_s17 = int_to_ptr.vmem [resolvable:$true] %s436_s17 }
  0x29   :  { %588 = vmatprep.subr.bf16.mxu0 %v587_v3  ;;  %v814_v11 = vld [vmem:[#allocation2 + $0x8] sm:$0xff]  ;;  %v82_v12 = vmul.f32 %v812_v9, %v812_v9  ;;  %v818_v13 = vld [vmem:[#allocation2 + $0x18] sm:$0xff]  ;;  %v595_v15 = vpack.c.bf16 %v67_v8, %v66_v7  ;;  %v824_v17 = vld [vmem:[#allocation2 + $0x20] sm:$0xff]  ;;  %s727_s18 = scalar_lea.vmem %s437_s17, 16  ;;  %s731_s19 = scalar_lea.vmem %s437_s17, 32 }
  0x2a   :  { %590 = vmatpush3.bf16.xpose.msra.mxu0 %v587_v3  ;;  %96 = vadd.xlane.f32.xlu0 %v80_v10  ;;  %v81_v14 = vmul.f32 %v814_v11, %v814_v11  ;;  %v83_v16 = vmul.f32 %v818_v13, %v818_v13  ;;  %v826_v18 = vld [vmem:[#allocation2 + $0x28] sm:$0xff]  ;;  %v84_v19 = vmul.f32 %v824_v17, %v824_v17  ;;  %v68_v21 = vld [vmem:[#allocation5 + $0x30] sm:$0xff]  ;;  %v69_v22 = vld [vmem:[#allocation5 + $0x38] sm:$0xff]  ;;  %p728_p2 = scmp.ne.s32.totalorder %s437_s17, %s727_s18  ;;  %p732_p3 = scmp.lt.s32.totalorder %s437_s17, %s437_s17 }
  0x2b   :  { %592 = vmatprep.subr.bf16.mxu0 %v591_v5  ;;  %100 = vadd.xlane.f32.xlu1 %v82_v12  ;;  %v85_v20 = vmul.f32 %v826_v18, %v826_v18  ;;  %v52_v23 = vld [vmem:[#allocation2 + $0x30] sm:$0xff]  ;;  %v53_v24 = vld [vmem:[#allocation2 + $0x38] sm:$0xff]  ;;  %v599_v26 = vpack.c.bf16 %v69_v22, %v68_v21  ;;  %v54_v28 = vld [vmem:[#allocation2 + $0x40] sm:$0xff]  ;;  %p733_p4 = scmp.lt.s32.totalorder %s731_s19, %s727_s18 }
  0x2c   :  { %v86_v25 = vmul.f32 %v52_v23, %v52_v23  ;;  %v87_v27 = vmul.f32 %v53_v24, %v53_v24  ;;  %v55_v29 = vld [vmem:[#allocation2 + $0x48] sm:$0xff]  ;;  %v88_v30 = vmul.f32 %v54_v28, %v54_v28  ;;  %v70_v32 = vld [vmem:[#allocation5 + $0x40] sm:$0xff]  ;;  %v56_v34 = vld [vmem:[#allocation2 + $0x50] sm:$0xff] }
  0x2d   :  { %v89_v31 = vmul.f32 %v55_v29, %v55_v29  ;;  %v71_v33 = vld [vmem:[#allocation5 + $0x48] sm:$0xff]  ;;  %v57_v35 = vld [vmem:[#allocation2 + $0x58] sm:$0xff]  ;;  %v90_v36 = vmul.f32 %v56_v34, %v56_v34  ;;  %v58_v39 = vld [vmem:[#allocation2 + $0x60] sm:$0xff]  ;;  %p734_p5 = por %p733_p4, %p732_p3 }
  0x2e   :  { %98 = vadd.xlane.f32.xlu0 %v81_v14  ;;  %v603_v37 = vpack.c.bf16 %v71_v33, %v70_v32  ;;  %v91_v38 = vmul.f32 %v57_v35, %v57_v35  ;;  %v59_v40 = vld [vmem:[#allocation2 + $0x68] sm:$0xff]  ;;  %v92_v41 = vmul.f32 %v58_v39, %v58_v39  ;;  %v72_v43 = vld [vmem:[#allocation5 + $0x50] sm:$0xff]  ;;  %v73_v44 = vld [vmem:[#allocation5 + $0x58] sm:$0xff] }
  0x2f   :  { %102 = vadd.xlane.f32.xlu1 %v83_v16  ;;  %v93_v42 = vmul.f32 %v59_v40, %v59_v40  ;;  %v60_v45 = vld [vmem:[#allocation2 + $0x70] sm:$0xff]  ;;  %v61_v46 = vld [vmem:[#allocation2 + $0x78] sm:$0xff]  ;;  %v607_v48 = vpack.c.bf16 %v73_v44, %v72_v43  ;;  %v74_v50 = vld [vmem:[#allocation5 + $0x60] sm:$0xff]  ;;  %p735_p6 = pnand %p734_p5, %p728_p2 }
  0x30   :  { %v94_v47 = vmul.f32 %v60_v45, %v60_v45  ;;  %v95_v49 = vmul.f32 %v61_v46, %v61_v46  ;;  %v75_v51 = vld [vmem:[#allocation5 + $0x68] sm:$0xff]  ;;  %v76_v53 = vld [vmem:[#allocation5 + $0x70] sm:$0xff]  ;;  %v77_v54 = vld [vmem:[#allocation5 + $0x78] sm:$0xff] }
  0x31   :  { %v611_v52 = vpack.c.bf16 %v75_v51, %v74_v50  ;;  %v615_v55 = vpack.c.bf16 %v77_v54, %v76_v53  ;;  %v841_v0 = vld [vmem:[%s883_s2] ss:$0 sm:$0xff] }
  0x32   :  { %594 = vmatpush3.bf16.xpose.msra.mxu0 %v591_v5  ;;  %104 = vadd.xlane.f32.xlu0 %v84_v19 }
  0x33   :  { %596 = vmatprep.subr.bf16.mxu0 %v595_v15  ;;  %106 = vadd.xlane.f32.xlu1 %v85_v20 }
  0x36   :  { %108 = vadd.xlane.f32.xlu0 %v86_v25 }
  0x37   :  { %110 = vadd.xlane.f32.xlu1 %v87_v27 }
  0x3a   :  { %598 = vmatpush3.bf16.xpose.msra.mxu0 %v595_v15  ;;  %112 = vadd.xlane.f32.xlu0 %v88_v30 }
  0x3b   :  { %600 = vmatprep.subr.bf16.mxu0 %v599_v26  ;;  %114 = vadd.xlane.f32.xlu1 %v89_v31 }
  0x3e   :  { %116 = vadd.xlane.f32.xlu0 %v90_v36 }
  0x3f   :  { %118 = vadd.xlane.f32.xlu1 %v91_v38 }
  0x42   :  { %602 = vmatpush3.bf16.xpose.msra.mxu0 %v599_v26  ;;  %120 = vadd.xlane.f32.xlu0 %v92_v41 }
  0x43   :  { %604 = vmatprep.subr.bf16.mxu0 %v603_v37  ;;  %122 = vadd.xlane.f32.xlu1 %v93_v42 }
  0x46   :  { %124 = vadd.xlane.f32.xlu0 %v94_v47 }
  0x47   :  { %126 = vadd.xlane.f32.xlu1 %v95_v49 }
  0x4a   :  { %606 = vmatpush3.bf16.xpose.msra.mxu0 %v603_v37 }
  0x4b   :  { %608 = vmatprep.subr.bf16.mxu0 %v607_v48 }
  0x52   :  { %610 = vmatpush3.bf16.xpose.msra.mxu0 %v607_v48 }
  0x53   :  { %612 = vmatprep.subr.bf16.mxu0 %v611_v52 }
  0x5a   :  { %614 = vmatpush3.bf16.xpose.msra.mxu0 %v611_v52 }
  0x5b   :  { %616 = vmatprep.subr.bf16.mxu0 %v615_v55 }
  0x62   :  { %618 = vmatpush3.bf16.xpose.msra.mxu0 %v615_v55 }
  0x69   :  { %529 = vmatmul.mubr.f32.vlgmr.msra.gmra.mrb[0].mxu0 %v814_v11 }
  0x6a   :  { %531 = vmatprep.mubr.f32.mxu0 %v812_v9 }
  0x6d   :  { %532 = vmatmul.mubr.f32.gmra.mrb[2].mxu0 %v818_v13 }
  0x6e   :  { %534 = vmatprep.mubr.f32.mxu0 %v824_v17 }
  0x71   :  { %535 = vmatmul.mubr.f32.gmra.mrb[4].mxu0 %v826_v18 }
  0x72   :  { %537 = vmatprep.mubr.f32.mxu0 %v52_v23 }
  0x75   :  { %538 = vmatmul.mubr.f32.gmra.mrb[6].mxu0 %v53_v24 }
  0x76   :  { %540 = vmatprep.mubr.f32.mxu0 %v54_v28 }
  0x79   :  { %541 = vmatmul.mubr.f32.gmra.mrb[8].mxu0 %v55_v29 }
  0x7a   :  { %543 = vmatprep.mubr.f32.mxu0 %v56_v34 }
  0x7d   :  { %544 = vmatmul.mubr.f32.gmra.mrb[10].mxu0 %v57_v35 }
  0x7e   :  { %546 = vmatprep.mubr.f32.mxu0 %v58_v39 }
  0x81   :  { %547 = vmatmul.mubr.f32.gmra.mrb[12].mxu0 %v59_v40 }
  0x82   :  { %549 = vmatprep.mubr.f32.mxu0 %v60_v45 }
  0x85   :  { %550 = vmatmul.mubr.f32.gmra.mrb[14].mxu0 %v61_v46 }
  0xb7   :  { %v97_v58 = vpop.xlane.xlu0 %96 }
  0xb8   :  { %v101_v59 = vpop.xlane.xlu1 %100  ;;  %v128_v63 = vmul.f32 -0.5, %v97_v58 }
  0xb9   :  { %v130_v6 = vmul.f32 -0.5, %v101_v59 }
  0xbb   :  { %v99_v60 = vpop.xlane.xlu0 %98 }
  0xbc   :  { %v129_v61 = vmul.f32 -0.5, %v99_v60  ;;  %v103_v62 = vpop.xlane.xlu1 %102 }
  0xbd   :  { %v131_v4 = vmul.f32 -0.5, %v103_v62 }
  0xbf   :  { %v105_v9 = vpop.xlane.xlu0 %104 }
  0xc0   :  { %v107_v5 = vpop.xlane.xlu1 %106  ;;  %v132_v19 = vmul.f32 -0.5, %v105_v9 }
  0xc1   :  { %v133_v15 = vmul.f32 -0.5, %v107_v5 }
  0xc3   :  { %v109_v22 = vpop.xlane.xlu0 %108 }
  0xc4   :  { %v111_v16 = vpop.xlane.xlu1 %110  ;;  %v134_v33 = vmul.f32 -0.5, %v109_v22 }
  0xc5   :  { %v135_v29 = vmul.f32 -0.5, %v111_v16 }
  0xc7   :  { %v113_v36 = vpop.xlane.xlu0 %112 }
  0xc8   :  { %v115_v30 = vpop.xlane.xlu1 %114  ;;  %v136_v47 = vmul.f32 -0.5, %v113_v36 }
  0xc9   :  { %v137_v43 = vmul.f32 -0.5, %v115_v30 }
  0xcb   :  { %v117_v50 = vpop.xlane.xlu0 %116 }
  0xcc   :  { %v119_v44 = vpop.xlane.xlu1 %118  ;;  %v138_v62 = vmul.f32 -0.5, %v117_v50 }
  0xcd   :  { %v139_v58 = vmul.f32 -0.5, %v119_v44 }
  0xd0   :  { %v123_v59 = vpop.xlane.xlu1 %122 }
 0x13c   :  { %v530_v1 = vpop.f32.mrb[0].mxu0 }
 0x13d   :  { %v216_v2 = vadd.f32 %v530_v1, %v129_v61  ;;  %v210_v3 = vpop.f32.mrb[1].mxu0 }
 0x13e   :  { %v211_v7 = vadd.f32 %v210_v3, %v128_v63  ;;  %v121_v3 = vpop.xlane.xlu0 %120 }
 0x13f   :  { %v296_v8 = vadd.f32 %v841_v0, %v216_v2  ;;  %v140_v16 = vmul.f32 -0.5, %v121_v3 }
 0x140   :  { %v295_v10 = vadd.f32 %v841_v0, %v211_v7  ;;  %v533_v11 = vpop.f32.mrb[2].mxu0 }
 0x141   :  { %v312_v12 = vmin.f32 %v296_v8, 0.0  ;;  %v226_v13 = vadd.f32 %v533_v11, %v131_v4  ;;  %v220_v14 = vpop.f32.mrb[3].mxu0  ;;  %v141_v8 = vmul.f32 -0.5, %v123_v59 }
 0x142   :  { %v311_v17 = vmin.f32 %v295_v10, 0.0  ;;  %v221_v18 = vadd.f32 %v220_v14, %v130_v6 }
 0x143   :  { %v329_v20 = vmul.f32 1.442695, %v312_v12  ;;  %v298_v21 = vadd.f32 %v841_v0, %v226_v13  ;;  %v127_v13 = vpop.xlane.xlu1 %126 }
 0x144   :  { %v327_v23 = vmul.f32 1.442695, %v311_v17  ;;  %v297_v24 = vadd.f32 %v841_v0, %v221_v18  ;;  %v536_v25 = vpop.f32.mrb[4].mxu0 }
 0x145   :  { %651 = vpow2.f32 %v329_v20  ;;  %v314_v26 = vmin.f32 %v298_v21, 0.0  ;;  %v236_v27 = vadd.f32 %v536_v25, %v133_v15  ;;  %v230_v28 = vpop.f32.mrb[5].mxu0  ;;  %v125_v20 = vpop.xlane.xlu0 %124  ;;  %v143_v25 = vmul.f32 -0.5, %v127_v13 }
 0x146   :  { %653 = vpow2.f32 %v327_v23  ;;  %v313_v31 = vmin.f32 %v297_v24, 0.0  ;;  %v231_v32 = vadd.f32 %v230_v28, %v132_v19 }
 0x147   :  { %v333_v34 = vmul.f32 1.442695, %v314_v26  ;;  %v300_v35 = vadd.f32 %v841_v0, %v236_v27 }
 0x148   :  { %v331_v37 = vmul.f32 1.442695, %v313_v31  ;;  %v299_v38 = vadd.f32 %v841_v0, %v231_v32  ;;  %v539_v39 = vpop.f32.mrb[6].mxu0  ;;  %v142_v32 = vmul.f32 -0.5, %v125_v20 }
 0x149   :  { %655 = vpow2.f32 %v333_v34  ;;  %v316_v40 = vmin.f32 %v300_v35, 0.0  ;;  %v246_v41 = vadd.f32 %v539_v39, %v135_v29  ;;  %v240_v42 = vpop.f32.mrb[7].mxu0 }
 0x14a   :  { %657 = vpow2.f32 %v331_v37  ;;  %v315_v45 = vmin.f32 %v299_v38, 0.0  ;;  %v241_v46 = vadd.f32 %v240_v42, %v134_v33 }
 0x14b   :  { %v337_v48 = vmul.f32 1.442695, %v316_v40  ;;  %v302_v49 = vadd.f32 %v841_v0, %v246_v41 }
 0x14c   :  { %v335_v51 = vmul.f32 1.442695, %v315_v45  ;;  %v301_v52 = vadd.f32 %v841_v0, %v241_v46  ;;  %v542_v53 = vpop.f32.mrb[8].mxu0 }
 0x14d   :  { %659 = vpow2.f32 %v337_v48  ;;  %v318_v54 = vmin.f32 %v302_v49, 0.0  ;;  %v256_v55 = vadd.f32 %v542_v53, %v137_v43  ;;  %v250_v57 = vpop.f32.mrb[9].mxu0 }
 0x14e   :  { %661 = vpow2.f32 %v335_v51  ;;  %v317_v60 = vmin.f32 %v301_v52, 0.0  ;;  %v251_v61 = vadd.f32 %v250_v57, %v136_v47 }
 0x14f   :  { %v652_v63 = vpop.eup %651  ;;  %v341_v1 = vmul.f32 1.442695, %v318_v54  ;;  %v304_v2 = vadd.f32 %v841_v0, %v256_v55 }
 0x150   :  { %v654_v4 = vpop.eup %653  ;;  %v339_v5 = vmul.f32 1.442695, %v317_v60  ;;  %v303_v6 = vadd.f32 %v841_v0, %v251_v61  ;;  %v545_v7 = vpop.f32.mrb[10].mxu0 }
 0x151   :  { %663 = vpow2.f32 %v341_v1  ;;  %v620_v9 = vpack.c.bf16 %v652_v63, %v654_v4  ;;  %v320_v10 = vmin.f32 %v304_v2, 0.0  ;;  %v266_v11 = vadd.f32 %v545_v7, %v139_v58  ;;  %v260_v12 = vpop.f32.mrb[11].mxu0 }
 0x152   :  { %665 = vpow2.f32 %v339_v5  ;;  %v319_v14 = vmin.f32 %v303_v6, 0.0  ;;  %v261_v15 = vadd.f32 %v260_v12, %v138_v62  ;;  %v79_v6 = vld [vmem:[%s884_s3] sm:$0x1] }
 0x153   :  { %v656_v17 = vpop.eup %655  ;;  %621 = vmatpush3.bf16.xpose.msra.mxu1 %v620_v9  ;;  %v345_v18 = vmul.f32 1.442695, %v320_v10  ;;  %v306_v19 = vadd.f32 %v841_v0, %v266_v11 }
 0x154   :  { %v658_v21 = vpop.eup %657  ;;  %622 = vmatprep.subr.bf16.mxu1 %v759_v56  ;;  %v343_v22 = vmul.f32 1.442695, %v319_v14  ;;  %v305_v23 = vadd.f32 %v841_v0, %v261_v15  ;;  %v548_v24 = vpop.f32.mrb[12].mxu0 }
 0x155   :  { %667 = vpow2.f32 %v345_v18  ;;  %v623_v26 = vpack.c.bf16 %v656_v17, %v658_v21  ;;  %v322_v27 = vmin.f32 %v306_v19, 0.0  ;;  %v276_v28 = vadd.f32 %v548_v24, %v141_v8  ;;  %v270_v29 = vpop.f32.mrb[13].mxu0 }
 0x156   :  { %669 = vpow2.f32 %v343_v22  ;;  %v321_v30 = vmin.f32 %v305_v23, 0.0  ;;  %v271_v31 = vadd.f32 %v270_v29, %v140_v16 }
 0x157   :  { %v660_v33 = vpop.eup %659  ;;  %v349_v34 = vmul.f32 1.442695, %v322_v27  ;;  %v308_v35 = vadd.f32 %v841_v0, %v276_v28 }
 0x158   :  { %v662_v36 = vpop.eup %661  ;;  %v347_v37 = vmul.f32 1.442695, %v321_v30  ;;  %v307_v38 = vadd.f32 %v841_v0, %v271_v31  ;;  %v551_v39 = vpop.f32.mrb[14].mxu0 }
 0x159   :  { %671 = vpow2.f32 %v349_v34  ;;  %v626_v40 = vpack.c.bf16 %v660_v33, %v662_v36  ;;  %v324_v41 = vmin.f32 %v308_v35, 0.0  ;;  %v286_v42 = vadd.f32 %v551_v39, %v143_v25  ;;  %v280_v43 = vpop.f32.mrb[15].mxu0 }
 0x15a   :  { %673 = vpow2.f32 %v347_v37  ;;  %v323_v44 = vmin.f32 %v307_v38, 0.0  ;;  %v281_v45 = vadd.f32 %v280_v43, %v142_v32 }
 0x15b   :  { %v664_v46 = vpop.eup %663  ;;  %624 = vmatpush3.bf16.xpose.msra.mxu1 %v623_v26  ;;  %v353_v47 = vmul.f32 1.442695, %v324_v41  ;;  %v310_v48 = vadd.f32 %v841_v0, %v286_v42 }
 0x15c   :  { %v666_v49 = vpop.eup %665  ;;  %625 = vmatprep.subr.bf16.mxu1 %v759_v56  ;;  %v351_v50 = vmul.f32 1.442695, %v323_v44  ;;  %v309_v51 = vadd.f32 %v841_v0, %v281_v45 }
 0x15d   :  { %675 = vpow2.f32 %v353_v47  ;;  %v629_v52 = vpack.c.bf16 %v664_v46, %v666_v49  ;;  %v326_v53 = vmin.f32 %v310_v48, 0.0 }
 0x15e   :  { %677 = vpow2.f32 %v351_v50  ;;  %v325_v54 = vmin.f32 %v309_v51, 0.0 }
 0x15f   :  { %v668_v55 = vpop.eup %667  ;;  %v357_v57 = vmul.f32 1.442695, %v326_v53 }
 0x160   :  { %v670_v58 = vpop.eup %669  ;;  %v355_v59 = vmul.f32 1.442695, %v325_v54 }
 0x161   :  { %679 = vpow2.f32 %v357_v57  ;;  %v632_v60 = vpack.c.bf16 %v668_v55, %v670_v58 }
 0x162   :  { %681 = vpow2.f32 %v355_v59 }
 0x163   :  { %v672_v61 = vpop.eup %671  ;;  %627 = vmatpush3.bf16.xpose.msra.mxu1 %v626_v40 }
 0x164   :  { %v674_v62 = vpop.eup %673  ;;  %628 = vmatprep.subr.bf16.mxu1 %v759_v56 }
 0x165   :  { %v635_v63 = vpack.c.bf16 %v672_v61, %v674_v62 }
 0x167   :  { %v676_v1 = vpop.eup %675 }
 0x168   :  { %v678_v0 = vpop.eup %677 }
 0x169   :  { %v638_v2 = vpack.c.bf16 %v676_v1, %v678_v0 }
 0x16b   :  { %v680_v3 = vpop.eup %679  ;;  %630 = vmatpush3.bf16.xpose.msra.mxu1 %v629_v52 }
 0x16c   :  { %v682_v4 = vpop.eup %681  ;;  %631 = vmatprep.subr.bf16.mxu1 %v759_v56 }
 0x16d   :  { %v641_v5 = vpack.c.bf16 %v680_v3, %v682_v4 }
 0x173   :  { %633 = vmatpush3.bf16.xpose.msra.mxu1 %v632_v60 }
 0x174   :  { %634 = vmatprep.subr.bf16.mxu1 %v759_v56 }
 0x17b   :  { %636 = vmatpush3.bf16.xpose.msra.mxu1 %v635_v63 }
 0x17c   :  { %637 = vmatprep.subr.bf16.mxu1 %v759_v56 }
 0x183   :  { %639 = vmatpush3.bf16.xpose.msra.mxu1 %v638_v2 }
 0x184   :  { %640 = vmatprep.subr.bf16.mxu1 %v759_v56 }
 0x18b   :  { %642 = vmatpush3.bf16.xpose.msra.mxu1 %v641_v5 }
 0x192   :  { %585 = vmatmul.mubr.f32.vlgmr.msra.gmra.mrb[0].mxu1 %v79_v6 }
 0x265   :  { %v425_v7 = vpop.f32.mrb[0].mxu1 }
 0x266   :  { %v426_v8 = vadd.f32 0.1, %v425_v7  ;;  %v586_v9 = vpop.f32.mrb[1].mxu1 }
 0x268   :  { %429 = vst [vmem:[#allocation7] sm:$0x1] %v426_v8 }
 0x269   :  { %738 = shalt.err (!%p735_p6)
}
 0x26a   :  { %s739_s3 = scalar_lea.hbm %s885_s4, 16 }
 0x26b   :  { %p740_p7 = scmp.ne.s32.totalorder %s885_s4, %s739_s3  ;;  %p743_p8 = scmp.lt.u32.totalorder %s739_s3, %s885_s4 }
 0x26d   :  { %p745_p9 = pnand %p743_p8, %p740_p7 }
 0x26f   :  { %748 = shalt.err (!%p745_p9)
}
 0x270   :  { %439 = dma.vmem_to_hbm [thread:$0]  %s437_s17, 16, %s885_s4, [#allocation4]  }
 0x271   :  { %753 = dma.done.wait [#allocation4], 16  }
 0x272   :  { %754 = vsyncadd [#allocation4], 4294967280 }
 0x273   :  { %443 = vsyncpa [#allocation3], 1 }
 0x274   :  { %444 = vsyncpa [#allocation6], 1 }
 0x275   :  { %445 = vsyncpa [#allocation4], 1 }

</bundles_post_ra>
